<compile_context>
chip_gen: v7x
topology: tpu7x:2x2x1
jax: 0.10.0
libtpu: 0.0.40
codegen_flags: <defaults>
</compile_context>

<pallas_src>
import math

import jax
import jax.numpy as jnp
from jax.experimental import pallas as pl
from jax.experimental.pallas import tpu as pltpu


def attention_kernel(x_ref, gw_ref, ctx_ref, attn_ref):
    """Fused LayerNorm + additive-attention kernel (one batch block).

    x_ref:    (bb, S, H)  lstm_output block
    gw_ref:   (1, 1, H)   gamma * attention_weights (layernorm affine folded in)
    ctx_ref:  (bb, H)     context vector output (input dtype)
    attn_ref: (bb, S)     softmax attention weights output (f32)
    """
    H = x_ref.shape[-1]
    gw = gw_ref[...]                                   # (1, 1, H) f32
    sum_gw = jnp.sum(gw)                               # scalar; tiny XLU reduce

    # --- single pass over the (bb,S,H) block: three independent lane reductions
    x = x_ref[...].astype(jnp.float32)
    s1 = jnp.sum(x, axis=-1, keepdims=True)            # (bb, S, 1)
    s2 = jnp.sum(x * x, axis=-1, keepdims=True)        # (bb, S, 1)
    sw = jnp.sum(x * gw, axis=-1, keepdims=True)       # (bb, S, 1)
    # x's live range ends here (re-read below for ctx): no full-block f32
    # value is kept alive across the softmax -> no spill pressure on vst.

    # LayerNorm statistics (torch defaults: eps=1e-5, biased variance).
    # var via E[x^2]-mean^2; clamp guards cancellation.
    inv_h = 1.0 / H
    mean = s1 * inv_h
    var = jnp.maximum(s2 * inv_h - mean * mean, 0.0)
    inv_std = jax.lax.rsqrt(var + 1e-5)                # EUP
    # scores = sum_h gw*(x-mean)/std  (beta*w term is constant over seq and
    # cancels in the softmax below).
    scores = (sw - mean * sum_gw) * inv_std            # (bb, S, 1)

    # softmax over the seq axis (dim=1 in the PyTorch code); keepdims layout.
    m = jnp.max(scores, axis=1, keepdims=True)
    e = jnp.exp(scores - m)
    denom = jnp.sum(e, axis=1, keepdims=True)          # (bb, 1, 1)
    r = pl.reciprocal(denom, approx=True)              # EUP seed
    r = r * (2.0 - denom * r)                          # one Newton step, free on (bb,1,1)
    attn = e * r                                       # (bb, S, 1)

    # context = sum_s lstm_output * attention_weights (raw x, not normed).
    # Re-read the already-resident VMEM input block instead of keeping the
    # earlier f32 up-cast live across the softmax.
    ctx = jnp.sum(x_ref[...].astype(jnp.float32) * attn, axis=1)   # (bb, H)

    ctx_ref[...] = ctx.astype(ctx_ref.dtype)
    attn_ref[...] = attn[..., 0]                        # squeeze only at the store


def _vmem_capacity_bytes():
    try:
        cap = int(pltpu.get_tpu_info().vmem_capacity_bytes)
        if cap > 0:
            return cap
    except Exception:
        pass
    return 64 * 1024 * 1024  # conservative default (v7x per-TC VMEM)


def _pick_batch_block(B, S, H, in_bytes, vmem_cap):
    """VMEM-budget-aware batch block (multiple of 8 sublanes)."""
    # Per-block bytes: double-buffered input + ~2 live f32 (bb,S,H) working
    # values.  Target ~1/4 of physical VMEM per block so buffering, outputs
    # and compiler scratch fit comfortably (v7x ~16 MiB, v5e/v6e ~32 MiB).
    budget = vmem_cap // 4
    per_row = S * H * (2 * in_bytes + 2 * 4)
    bb = budget // max(per_row, 1)
    bb = (int(bb) // 8) * 8
    bb = max(8, min(bb, 512))
    b8 = -(-B // 8) * 8
    # Keep >= 2 grid steps whenever the batch allows it so the 'parallel'
    # batch axis actually feeds both v7x TensorCores (harmless on 1-TC chips).
    if b8 >= 16:
        bb = min(bb, max(8, ((b8 // 2) // 8) * 8))
    return min(bb, b8)


def attention_layer(lstm_output, gamma, beta, attn_w, *, block_b=None):
    """Returns (context (B,H) in input dtype, attention weights (B,S) in f32).

    `beta` is accepted for API parity with the module but its score
    contribution is constant across seq and cancels under the seq softmax.
    """
    B, S, H = lstm_output.shape
    f32 = jnp.float32
    in_bytes = jnp.dtype(lstm_output.dtype).itemsize

    # Fold the layernorm scale into the attention weight vector (lane-major).
    gw = (gamma.astype(f32) * attn_w.astype(f32)[:, 0]).reshape(1, 1, H)

    cap = _vmem_capacity_bytes()
    if block_b is None:
        block_b = _pick_batch_block(B, S, H, in_bytes, cap)
    block_b = max(8, (int(block_b) // 8) * 8)

    # Pad batch to a multiple of the block; padded rows are all-zero and are
    # numerically safe (var clamp + eps), outputs are sliced back below.
    Bp = -(-B // block_b) * block_b
    x_in = lstm_output
    if Bp != B:
        x_in = jnp.pad(lstm_output, ((0, Bp - B), (0, 0), (0, 0)))
    grid = (Bp // block_b,)
    steps = grid[0]

    # Deeper input buffering when blocks are small and the grid is deep
    # (hides per-step DMA latency; mainly a v7x win). Gate on the VMEM budget.
    blk_in_bytes = block_b * S * H * in_bytes
    use_tri = (
        steps >= 3
        and blk_in_bytes <= (2 << 20)
        and 3 * blk_in_bytes + 4 * block_b * S * H * 4 <= cap // 2
    )
    if use_tri:
        x_spec = pl.BlockSpec((block_b, S, H), lambda b: (b, 0, 0),
                              pipeline_mode=pl.Buffered(3))
    else:
        x_spec = pl.BlockSpec((block_b, S, H), lambda b: (b, 0, 0))

    ctx, attn = pl.pallas_call(
        attention_kernel,
        out_shape=(
            jax.ShapeDtypeStruct((Bp, H), lstm_output.dtype),
            jax.ShapeDtypeStruct((Bp, S), jnp.float32),
        ),
        grid=grid,
        in_specs=[
            x_spec,
            pl.BlockSpec((1, 1, H), lambda b: (0, 0, 0)),
        ],
        out_specs=(
            pl.BlockSpec((block_b, H), lambda b: (b, 0)),
            pl.BlockSpec((block_b, S), lambda b: (b, 0)),
        ),
        compiler_params=pltpu.CompilerParams(
            dimension_semantics=("parallel",),   # batch axis shards across TCs
            vmem_limit_bytes=int(cap * 7 // 8),  # raise scoped limit toward physical
        ),
    )(x_in, gw)

    if Bp != B:
        ctx = ctx[:B]
        attn = attn[:B]
    return ctx, attn


def reference(lstm_output, gamma, beta, attn_w):
    x = lstm_output.astype(jnp.float32)
    mean = jnp.mean(x, axis=-1, keepdims=True)
    var = jnp.mean((x - mean) ** 2, axis=-1, keepdims=True)
    normed = (x - mean) / jnp.sqrt(var + 1e-5) * gamma + beta
    scores = normed @ attn_w                            # (B, S, 1)
    attn = jax.nn.softmax(scores, axis=1)
    ctx = jnp.sum(x * attn, axis=1)
    return ctx, attn[..., 0]


def _run_case(B, S, H, key):
    kx, kw, kg, kb = jax.random.split(key, 4)
    lstm_output = jax.random.normal(kx, (B, S, H), dtype=jnp.float32)
    # attention_weights: xavier_uniform_ on (H, 1).
    bound = math.sqrt(6.0 / (H + 1))
    attn_w = jax.random.uniform(kw, (H, 1), dtype=jnp.float32,
                                minval=-bound, maxval=bound)
    # Module init is gamma=1, beta=0; perturb so the gamma-into-w fusion and
    # beta cancellation are actually exercised.
    gamma = 1.0 + 0.1 * jax.random.normal(kg, (H,), dtype=jnp.float32)
    beta = 0.1 * jax.random.normal(kb, (H,), dtype=jnp.float32)

    ctx, attn = attention_layer(lstm_output, gamma, beta, attn_w)
    jax.block_until_ready((ctx, attn))

    ctx_ref, attn_ref = reference(lstm_output, gamma, beta, attn_w)
    assert ctx.shape == (B, H) and attn.shape == (B, S)
    assert jnp.allclose(ctx, ctx_ref, atol=1e-4, rtol=1e-4), \
        float(jnp.max(jnp.abs(ctx - ctx_ref)))
    assert jnp.allclose(attn, attn_ref, atol=1e-5, rtol=1e-4), \
        float(jnp.max(jnp.abs(attn - attn_ref)))


if __name__ == "__main__":
    key = jax.random.PRNGKey(0)
    k1, k2, k3 = jax.random.split(key, 3)
    _run_case(2, 8, 32, k1)    # baseline demo shape (padded 2 -> 8, single block)
    _run_case(5, 8, 32, k2)    # odd batch -> pad + output slice path
    _run_case(24, 8, 32, k3)   # 3-step grid -> dual-TC sharding + Buffered(3) input
    print("KERNEL_OK")
</pallas_src>

<mosaic_0001>
module attributes {stable_mosaic.version = 11 : i64} {
  func.func @attention_kernel(%arg0: i32, %arg1: memref<8x8x32xf32, #tpu.memory_space<vmem>>, %arg2: memref<1x1x32xf32, #tpu.memory_space<vmem>>, %arg3: memref<8x32xf32, #tpu.memory_space<vmem>>, %arg4: memref<8x8xf32, #tpu.memory_space<vmem>>) attributes {dimension_semantics = [#tpu.dimension_semantics<parallel>], iteration_bounds = array<i64: 1>, scalar_prefetch = 0 : i64, scratch_operands = 0 : i64, tpu.core_type = #tpu.core_type<tc>, window_params = [{transform_indices = @transform_0, window_bounds = array<i64: 8, 8, 32>}, {pipeline_mode = #tpu.pipeline_mode<synchronous>, transform_indices = @transform_1, window_bounds = array<i64: 1, 1, 32>}, {transform_indices = @transform_2, window_bounds = array<i64: 8, 32>}, {transform_indices = @transform_3, window_bounds = array<i64: 8, 8>}]} {
    %c0 = arith.constant 0 : index
    %c0_0 = arith.constant 0 : index
    %c0_1 = arith.constant 0 : index
    %0 = vector.load %arg2[%c0, %c0_0, %c0_1] : memref<1x1x32xf32, #tpu.memory_space<vmem>>, vector<1x1x32xf32>
    %1 = vector.shape_cast %0 : vector<1x1x32xf32> to vector<1x1x1x32xf32>
    %cst = arith.constant dense<0.000000e+00> : vector<1xf32>
    %2 = vector.multi_reduction <add>, %1, %cst [1, 2, 3] : vector<1x1x1x32xf32> to vector<1xf32>
    %3 = vector.shape_cast %2 : vector<1xf32> to vector<1x1x1x1xf32>
    %4 = vector.extract %3[0, 0, 0, 0] : f32 from vector<1x1x1x1xf32>
    %c0_2 = arith.constant 0 : index
    %c0_3 = arith.constant 0 : index
    %c0_4 = arith.constant 0 : index
    %5 = vector.load %arg1[%c0_2, %c0_3, %c0_4] : memref<8x8x32xf32, #tpu.memory_space<vmem>>, vector<8x8x32xf32>
    %cst_5 = arith.constant dense<0.000000e+00> : vector<8x8xf32>
    %6 = vector.multi_reduction <add>, %5, %cst_5 [2] : vector<8x8x32xf32> to vector<8x8xf32>
    %7 = vector.shape_cast %6 : vector<8x8xf32> to vector<8x8x1xf32>
    %8 = arith.mulf %5, %5 : vector<8x8x32xf32>
    %cst_6 = arith.constant dense<0.000000e+00> : vector<8x8xf32>
    %9 = vector.multi_reduction <add>, %8, %cst_6 [2] : vector<8x8x32xf32> to vector<8x8xf32>
    %10 = vector.shape_cast %9 : vector<8x8xf32> to vector<8x8x1xf32>
    %11 = vector.broadcast %0 : vector<1x1x32xf32> to vector<8x8x32xf32>
    %12 = arith.mulf %5, %11 : vector<8x8x32xf32>
    %cst_7 = arith.constant dense<0.000000e+00> : vector<8x8xf32>
    %13 = vector.multi_reduction <add>, %12, %cst_7 [2] : vector<8x8x32xf32> to vector<8x8xf32>
    %14 = vector.shape_cast %13 : vector<8x8xf32> to vector<8x8x1xf32>
    %cst_8 = arith.constant 3.125000e-02 : f32
    %15 = vector.broadcast %cst_8 : f32 to vector<8x8x1xf32>
    %16 = arith.mulf %7, %15 : vector<8x8x1xf32>
    %cst_9 = arith.constant 3.125000e-02 : f32
    %17 = vector.broadcast %cst_9 : f32 to vector<8x8x1xf32>
    %18 = arith.mulf %10, %17 : vector<8x8x1xf32>
    %19 = arith.mulf %16, %16 : vector<8x8x1xf32>
    %20 = arith.subf %18, %19 : vector<8x8x1xf32>
    %cst_10 = arith.constant 0.000000e+00 : f32
    %21 = vector.broadcast %cst_10 : f32 to vector<8x8x1xf32>
    %22 = arith.maximumf %20, %21 : vector<8x8x1xf32>
    %cst_11 = arith.constant 9.99999974E-6 : f32
    %23 = vector.broadcast %cst_11 : f32 to vector<8x8x1xf32>
    %24 = arith.addf %22, %23 : vector<8x8x1xf32>
    %25 = math.rsqrt %24 : vector<8x8x1xf32>
    %26 = vector.broadcast %4 : f32 to vector<8x8x1xf32>
    %27 = arith.mulf %16, %26 : vector<8x8x1xf32>
    %28 = arith.subf %14, %27 : vector<8x8x1xf32>
    %29 = arith.mulf %28, %25 : vector<8x8x1xf32>
    %cst_12 = arith.constant dense<0xFF800000> : vector<8x1xf32>
    %30 = vector.multi_reduction <maximumf>, %29, %cst_12 [1] : vector<8x8x1xf32> to vector<8x1xf32>
    %31 = vector.shape_cast %30 : vector<8x1xf32> to vector<8x1x1xf32>
    %32 = vector.broadcast %31 : vector<8x1x1xf32> to vector<8x8x1xf32>
    %33 = arith.subf %29, %32 : vector<8x8x1xf32>
    %34 = math.exp %33 : vector<8x8x1xf32>
    %cst_13 = arith.constant dense<0.000000e+00> : vector<8x1xf32>
    %35 = vector.multi_reduction <add>, %34, %cst_13 [1] : vector<8x8x1xf32> to vector<8x1xf32>
    %36 = vector.shape_cast %35 : vector<8x1xf32> to vector<8x1x1xf32>
    %37 = tpu.reciprocal %36 {approx = true} : vector<8x1x1xf32> -> vector<8x1x1xf32>
    %38 = arith.mulf %36, %37 : vector<8x1x1xf32>
    %cst_14 = arith.constant 2.000000e+00 : f32
    %39 = vector.broadcast %cst_14 : f32 to vector<8x1x1xf32>
    %40 = arith.subf %39, %38 : vector<8x1x1xf32>
    %41 = arith.mulf %37, %40 : vector<8x1x1xf32>
    %42 = vector.broadcast %41 : vector<8x1x1xf32> to vector<8x8x1xf32>
    %43 = arith.mulf %34, %42 : vector<8x8x1xf32>
    %c0_15 = arith.constant 0 : index
    %c0_16 = arith.constant 0 : index
    %c0_17 = arith.constant 0 : index
    %44 = vector.load %arg1[%c0_15, %c0_16, %c0_17] : memref<8x8x32xf32, #tpu.memory_space<vmem>>, vector<8x8x32xf32>
    %45 = vector.broadcast %43 : vector<8x8x1xf32> to vector<8x8x32xf32>
    %46 = arith.mulf %44, %45 : vector<8x8x32xf32>
    %cst_18 = arith.constant dense<0.000000e+00> : vector<8x32xf32>
    %47 = vector.multi_reduction <add>, %46, %cst_18 [1] : vector<8x8x32xf32> to vector<8x32xf32>
    %c0_19 = arith.constant 0 : index
    %c0_20 = arith.constant 0 : index
    %48 = vector.load %arg3[%c0_19, %c0_20] : memref<8x32xf32, #tpu.memory_space<vmem>>, vector<8x32xf32>
    tpu.vector_store %arg3[%c0_19, %c0_20], %47 {strides = array<i32>} : memref<8x32xf32, #tpu.memory_space<vmem>>, vector<8x32xf32>,
    %49 = vector.shape_cast %43 : vector<8x8x1xf32> to vector<8x8xf32>
    %c0_21 = arith.constant 0 : index
    %c0_22 = arith.constant 0 : index
    %50 = vector.load %arg4[%c0_21, %c0_22] : memref<8x8xf32, #tpu.memory_space<vmem>>, vector<8x8xf32>
    tpu.vector_store %arg4[%c0_21, %c0_22], %49 {strides = array<i32>} : memref<8x8xf32, #tpu.memory_space<vmem>>, vector<8x8xf32>,
    return
  }
  func.func @transform_0(%arg0: i32) -> (i32, i32, i32) {
    %c0_i32 = arith.constant 0 : i32
    %c0_i32_0 = arith.constant 0 : i32
    %c0_i32_1 = arith.constant 0 : i32
    return %arg0, %c0_i32, %c0_i32_0 : i32, i32, i32
  }
  func.func @transform_1(%arg0: i32) -> (i32, i32, i32) {
    %c0_i32 = arith.constant 0 : i32
    %c0_i32_0 = arith.constant 0 : i32
    %c0_i32_1 = arith.constant 0 : i32
    %c0_i32_2 = arith.constant 0 : i32
    return %c0_i32, %c0_i32_0, %c0_i32_1 : i32, i32, i32
  }
  func.func @transform_2(%arg0: i32) -> (i32, i32) {
    %c0_i32 = arith.constant 0 : i32
    %c0_i32_0 = arith.constant 0 : i32
    return %arg0, %c0_i32 : i32, i32
  }
  func.func @transform_3(%arg0: i32) -> (i32, i32) {
    %c0_i32 = arith.constant 0 : i32
    %c0_i32_0 = arith.constant 0 : i32
    return %arg0, %c0_i32 : i32, i32
  }
}

</mosaic_0001>

<bundles_post_ra>
// kernel: tpu_custom_call.1
= control target key start
LH: loop header
LB: loop body
LE: loop exit
PB: predicated region body
PF: predicated region fallthrough
CT: control target
= control target key end

     0   :  { %9 = vsyncpa [#allocation3], 0  ;;  %s990_s0 = inlined_call_operand.hbm [shape: f32[8,8,32], index: 0, kind: input, shape index: {}]   ;;  %s991_s1 = inlined_call_operand.vmem [shape: f32[1,1,32], index: 1, kind: input, shape index: {}]   ;;  %s992_s2 = inlined_call_operand.hbm [shape: f32[8,32], index: 2, kind: output, shape index: {0}]   ;;  %s993_s3 = inlined_call_operand.hbm [shape: f32[8,8], index: 3, kind: output, shape index: {1}]  }
   0x1   :  { %10 = vsyncpa [#allocation4], 0 }
   0x2   :  { %11 = vsyncpa [#allocation7], 0  ;;  %s681_s12 = smov [#allocation2]   ;;  %s609_s16 = scalar_lea.hbm %s990_s0, 1024 }
   0x3   :  { %s17_s13 = sshll.u32 %s681_s12, 4  ;;  %p610_p0 = scmp.ne.s32.totalorder %s990_s0, %s609_s16  ;;  %s18_s13 = int_to_ptr.vmem [resolvable:$true] %s17_s13 }
   0x4   :  { %p613_p1 = scmp.lt.u32.totalorder %s609_s16, %s990_s0 }
   0x6   :  { %p615_p2 = pnand %p613_p1, %p610_p0 }
   0x8   :  { %618 = shalt.err (!%p615_p2)
}
   0x9   :  { %s619_s21 = scalar_lea.vmem %s18_s13, 1024  ;;  %p624_p4 = scmp.lt.s32.totalorder %s18_s13, %s18_s13 }
   0xa   :  { %p620_p3 = scmp.ne.s32.totalorder %s18_s13, %s619_s21  ;;  %p625_p5 = scmp.lt.s32.totalorder %s619_s21, %s619_s21 }
   0xc   :  { %p626_p6 = por %p625_p5, %p624_p4 }
   0xe   :  { %p627_p7 = pnand %p626_p6, %p620_p3 }
  0x10   :  { %630 = shalt.err (!%p627_p7)
}
  0x11   :  { %s682_s22 = smov 128   ;;  %s683_s23 = smov 8  }
  0x12   :  { %23 = dma.hbm_to_vmem [thread:$0]  %s990_s0, 1024, %s18_s13, [#allocation3], %s682_s22, %s682_s22, %s683_s23  }
  0x13   :  { %675 = dma.done.wait [#allocation3], 1024  }
  0x14   :  { %676 = vsyncadd [#allocation3], 4294966272  ;;  %v107_v0 = vlaneseq  ;;  %vm30_vm0 = vcmask 253952   ;;  %v29_v4 = vld [vmem:[%s991_s1] sm:$0x1]  ;;  %vm49_vm1 = vcmask 261120  }
  0x15   :  { %v723_v5 = vld [vmem:[#allocation2] sm:$0xff]  ;;  %v725_v6 = vld [vmem:[#allocation2 + $0x8] sm:$0xff]  ;;  %v31_v7 = vsel %vm30_vm0, %v29_v4, 0.0  ;;  %v729_v9 = vld [vmem:[#allocation2 + $0x10] sm:$0xff]  ;;  %vm457_vm2 = vcmask 1041409   ;;  %vm459_vm3 = vcmask 1042434  }
  0x16   :  { %v108_v1 = vshrl.u32 %v107_v0, 7  ;;  %v482_v2 = vand.u32 127, %v107_v0  ;;  %v53_v8 = vsel %vm49_vm1, %v725_v6, 0.0  ;;  %32 = vadd.xlane.f32.xlu0 %v31_v7  ;;  %v50_v10 = vsel %vm49_vm1, %v723_v5, 0.0  ;;  %v737_v13 = vld [vmem:[#allocation2 + $0x18] sm:$0xff]  ;;  %v744_v17 = vld [vmem:[#allocation2 + $0x20] sm:$0xff] }
  0x17   :  { %54 = vadd.xlane.f32.xlu1 %v53_v8  ;;  %v56_v11 = vsel %vm49_vm1, %v729_v9, 0.0  ;;  %v74_v12 = vmul.f32 %v723_v5, %v723_v5  ;;  %v59_v14 = vsel %vm49_vm1, %v737_v13, 0.0  ;;  %v75_v15 = vmul.f32 %v725_v6, %v725_v6  ;;  %v751_v21 = vld [vmem:[#allocation2 + $0x28] sm:$0xff]  ;;  %v758_v25 = vld [vmem:[#allocation2 + $0x30] sm:$0xff]  ;;  %v765_v30 = vld [vmem:[#allocation2 + $0x38] sm:$0xff]  ;;  %s684_s1 = smov [#allocation5]  }
  0x18   :  { %v718_v3 = vsub.s32 %v482_v2, %v108_v1  ;;  %v76_v19 = vmul.f32 %v729_v9, %v729_v9  ;;  %v62_v20 = vsel %vm49_vm1, %v744_v17, 0.0  ;;  %v77_v23 = vmul.f32 %v737_v13, %v737_v13  ;;  %s531_s28 = sshll.u32 %s684_s1, 4  ;;  %s685_s29 = smov [#allocation6]   ;;  %s532_s28 = int_to_ptr.vmem [resolvable:$true] %s531_s28 }
  0x19   :  { %v82_v16 = vsel %vm49_vm1, %v74_v12, 0.0  ;;  %v85_v18 = vsel %vm49_vm1, %v75_v15, 0.0  ;;  %v65_v24 = vsel %vm49_vm1, %v751_v21, 0.0  ;;  %v109_v26 = vsub.s32 0, %v108_v1  ;;  %s541_s30 = sshll.u32 %s685_s29, 4  ;;  %s631_s4 = scalar_lea.vmem %s532_s28, 128  ;;  %s542_s30 = int_to_ptr.vmem [resolvable:$true] %s541_s30 }
  0x1a   :  { %51 = vadd.xlane.f32.xlu0 %v50_v10  ;;  %v88_v22 = vsel %vm49_vm1, %v76_v19, 0.0  ;;  %v91_v27 = vsel %vm49_vm1, %v77_v23, 0.0  ;;  %v68_v28 = vsel %vm49_vm1, %v758_v25, 0.0  ;;  %v78_v29 = vmul.f32 %v744_v17, %v744_v17  ;;  %p632_p8 = scmp.ne.s32.totalorder %s532_s28, %s631_s4  ;;  %p636_p9 = scmp.lt.s32.totalorder %s532_s28, %s532_s28 }
  0x1b   :  { %57 = vadd.xlane.f32.xlu1 %v56_v11  ;;  %v110_v31 = vrot.slane %v29_v4, %v109_v26  ;;  %v71_v33 = vsel %vm49_vm1, %v765_v30, 0.0  ;;  %v79_v34 = vmul.f32 %v751_v21, %v751_v21  ;;  %v80_v35 = vmul.f32 %v758_v25, %v758_v25  ;;  %p637_p10 = scmp.lt.s32.totalorder %s631_s4, %s631_s4 }
  0x1c   :  { %v94_v32 = vsel %vm49_vm1, %v78_v29, 0.0  ;;  %v81_v38 = vmul.f32 %v765_v30, %v765_v30  ;;  %vm461_vm4 = vcmask 1043459   ;;  %vm463_vm5 = vcmask 1044484  }
  0x1d   :  { %v97_v36 = vsel %vm49_vm1, %v79_v34, 0.0  ;;  %v100_v37 = vsel %vm49_vm1, %v80_v35, 0.0  ;;  %v112_v39 = vmul.f32 %v110_v31, %v723_v5  ;;  %v113_v42 = vmul.f32 %v110_v31, %v725_v6  ;;  %p638_p11 = por %p637_p10, %p636_p9 }
  0x1e   :  { %60 = vadd.xlane.f32.xlu0 %v59_v14  ;;  %v103_v40 = vsel %vm49_vm1, %v81_v38, 0.0  ;;  %v114_v43 = vmul.f32 %v110_v31, %v729_v9  ;;  %v115_v46 = vmul.f32 %v110_v31, %v737_v13  ;;  %v116_v47 = vmul.f32 %v110_v31, %v744_v17 }
  0x1f   :  { %83 = vadd.xlane.f32.xlu1 %v82_v16  ;;  %v120_v41 = vsel %vm49_vm1, %v112_v39, 0.0  ;;  %v123_v44 = vsel %vm49_vm1, %v113_v42, 0.0  ;;  %v117_v50 = vmul.f32 %v110_v31, %v751_v21  ;;  %v118_v51 = vmul.f32 %v110_v31, %v758_v25  ;;  %p639_p12 = pnand %p638_p11, %p632_p8 }
  0x20   :  { %v126_v45 = vsel %vm49_vm1, %v114_v43, 0.0  ;;  %v129_v48 = vsel %vm49_vm1, %v115_v46, 0.0  ;;  %v132_v49 = vsel %vm49_vm1, %v116_v47, 0.0  ;;  %v119_v54 = vmul.f32 %v110_v31, %v765_v30 }
  0x21   :  { %v135_v52 = vsel %vm49_vm1, %v117_v50, 0.0  ;;  %v138_v53 = vsel %vm49_vm1, %v118_v51, 0.0  ;;  %vm465_vm6 = vcmask 1045509   ;;  %vm467_vm7 = vcmask 1046534  }
  0x22   :  { %86 = vadd.xlane.f32.xlu0 %v85_v18  ;;  %v141_v55 = vsel %vm49_vm1, %v119_v54, 0.0  ;;  %vm469_vm8 = vcmask 1047559  }
  0x23   :  { %63 = vadd.xlane.f32.xlu1 %v62_v20 }
  0x26   :  { %89 = vadd.xlane.f32.xlu0 %v88_v22 }
  0x27   :  { %66 = vadd.xlane.f32.xlu1 %v65_v24 }
  0x2a   :  { %92 = vadd.xlane.f32.xlu0 %v91_v27 }
  0x2b   :  { %69 = vadd.xlane.f32.xlu1 %v68_v28 }
  0x2e   :  { %95 = vadd.xlane.f32.xlu0 %v94_v32 }
  0x2f   :  { %72 = vadd.xlane.f32.xlu1 %v71_v33 }
  0x32   :  { %98 = vadd.xlane.f32.xlu0 %v97_v36 }
  0x33   :  { %101 = vadd.xlane.f32.xlu1 %v100_v37 }
  0x36   :  { %104 = vadd.xlane.f32.xlu0 %v103_v40 }
  0x37   :  { %121 = vadd.xlane.f32.xlu1 %v120_v41 }
  0x3a   :  { %124 = vadd.xlane.f32.xlu0 %v123_v44 }
  0x3b   :  { %127 = vadd.xlane.f32.xlu1 %v126_v45 }
  0x3e   :  { %130 = vadd.xlane.f32.xlu0 %v129_v48 }
  0x3f   :  { %133 = vadd.xlane.f32.xlu1 %v132_v49 }
  0x42   :  { %136 = vadd.xlane.f32.xlu0 %v135_v52 }
  0x43   :  { %139 = vadd.xlane.f32.xlu1 %v138_v53 }
  0x46   :  { %142 = vadd.xlane.f32.xlu0 %v141_v55 }
  0xa3   :  { %v33_v56 = vpop.xlane.xlu0 %32 }
  0xa4   :  { %v55_v57 = vpop.xlane.xlu1 %54  ;;  %v34_v58 = vrot.slane %v33_v56, 4 }
  0xa5   :  { %v797_v20 = vmul.f32 0.03125, %v55_v57 }
  0xa6   :  { %v35_v59 = vadd.f32 %v34_v58, %v33_v56 }
  0xa7   :  { %v52_v60 = vpop.xlane.xlu0 %51  ;;  %v161_v28 = vmul.f32 %v797_v20, %v797_v20 }
  0xa8   :  { %v58_v61 = vpop.xlane.xlu1 %57  ;;  %v36_v62 = vrot.slane %v35_v59, 2  ;;  %v795_v18 = vmul.f32 0.03125, %v52_v60 }
  0xa9   :  { %v799_v22 = vmul.f32 0.03125, %v58_v61 }
  0xaa   :  { %v37_v63 = vadd.f32 %v36_v62, %v35_v59  ;;  %v160_v24 = vmul.f32 %v795_v18, %v795_v18 }
  0xab   :  { %v61_v0 = vpop.xlane.xlu0 %60  ;;  %v162_v33 = vmul.f32 %v799_v22, %v799_v22 }
  0xac   :  { %v84_v1 = vpop.xlane.xlu1 %83  ;;  %v38_v2 = vrot.slane %v37_v63, 1  ;;  %v801_v23 = vmul.f32 0.03125, %v61_v0 }
  0xad   :  { %v152_v26 = vmul.f32 0.03125, %v84_v1 }
  0xae   :  { %v39_v4 = vadd.f32 %v38_v2, %v37_v63  ;;  %v163_v37 = vmul.f32 %v801_v23, %v801_v23 }
  0xaf   :  { %v87_v7 = vpop.xlane.xlu0 %86  ;;  %v168_v40 = vsub.f32 %v152_v26, %v160_v24 }
  0xb0   :  { %v64_v8 = vpop.xlane.xlu1 %63  ;;  %554 = vpush %v39_v4  ;;  %v153_v29 = vmul.f32 0.03125, %v87_v7 }
  0xb1   :  { %v813_v35 = vmul.f32 0.03125, %v64_v8  ;;  %v176_v52 = vmax.f32 %v168_v40, 0.0 }
  0xb2   :  { %v169_v43 = vsub.f32 %v153_v29, %v161_v28 }
  0xb3   :  { %v90_v10 = vpop.xlane.xlu0 %89  ;;  %v164_v47 = vmul.f32 %v813_v35, %v813_v35  ;;  %v184_v62 = vadd.f32 1e-05, %v176_v52 }
  0xb4   :  { %v67_v11 = vpop.xlane.xlu1 %66  ;;  %v154_v34 = vmul.f32 0.03125, %v90_v10  ;;  %v177_v54 = vmax.f32 %v169_v43, 0.0 }
  0xb5   :  { %v149_v39 = vmul.f32 0.03125, %v67_v11  ;;  %561 = vrsqrt.f32 %v184_v62 }
  0xb6   :  { %v170_v46 = vsub.f32 %v154_v34, %v162_v33  ;;  %v185_v0 = vadd.f32 1e-05, %v177_v54 }
  0xb7   :  { %v93_v12 = vpop.xlane.xlu0 %92  ;;  %v165_v50 = vmul.f32 %v149_v39, %v149_v39 }
  0xb8   :  { %v70_v14 = vpop.xlane.xlu1 %69  ;;  %v155_v38 = vmul.f32 0.03125, %v93_v12  ;;  %v178_v56 = vmax.f32 %v170_v46, 0.0  ;;  %563 = vrsqrt.f32 %v185_v0 }
  0xb9   :  { %v805_v27 = vmul.f32 0.03125, %v70_v14 }
  0xba   :  { %v171_v49 = vsub.f32 %v155_v38, %v163_v37  ;;  %v186_v2 = vadd.f32 1e-05, %v178_v56 }
  0xbb   :  { %v96_v15 = vpop.xlane.xlu0 %95  ;;  %v166_v41 = vmul.f32 %v805_v27, %v805_v27 }
  0xbc   :  { %v73_v16 = vpop.xlane.xlu1 %72  ;;  %v156_v48 = vmul.f32 0.03125, %v96_v15  ;;  %v179_v58 = vmax.f32 %v171_v49, 0.0  ;;  %565 = vrsqrt.f32 %v186_v2 }
  0xbd   :  { %v809_v31 = vmul.f32 0.03125, %v73_v16 }
  0xbe   :  { %v172_v57 = vsub.f32 %v156_v48, %v164_v47  ;;  %v187_v7 = vadd.f32 1e-05, %v179_v58 }
  0xbf   :  { %v99_v19 = vpop.xlane.xlu0 %98  ;;  %v167_v44 = vmul.f32 %v809_v31, %v809_v31  ;;  %v562_v26 = vpop.eup %561 }
  0xc0   :  { %v102_v32 = vpop.xlane.xlu1 %101  ;;  %v157_v51 = vmul.f32 0.03125, %v99_v19  ;;  %v180_v4 = vmax.f32 %v172_v57, 0.0  ;;  %567 = vrsqrt.f32 %v187_v7 }
  0xc1   :  { %v158_v42 = vmul.f32 0.03125, %v102_v32 }
  0xc2   :  { %v173_v59 = vsub.f32 %v157_v51, %v165_v50  ;;  %v188_v15 = vadd.f32 1e-05, %v180_v4  ;;  %v564_v28 = vpop.eup %563 }
  0xc3   :  { %v105_v36 = vpop.xlane.xlu0 %104  ;;  %v174_v53 = vsub.f32 %v158_v42, %v166_v41 }
  0xc4   :  { %v159_v45 = vmul.f32 0.03125, %v105_v36  ;;  %v122_v60 = vpop.xlane.xlu1 %121  ;;  %v181_v8 = vmax.f32 %v173_v59, 0.0 }
  0xc5   :  { %v182_v63 = vmax.f32 %v174_v53, 0.0 }
  0xc6   :  { %v175_v55 = vsub.f32 %v159_v45, %v167_v44  ;;  %v189_v16 = vadd.f32 1e-05, %v181_v8  ;;  %v566_v29 = vpop.eup %565 }
  0xc7   :  { %v125_v61 = vpop.xlane.xlu0 %124  ;;  %v190_v10 = vadd.f32 1e-05, %v182_v63 }
  0xc8   :  { %v183_v1 = vmax.f32 %v175_v55, 0.0  ;;  %v128_v12 = vpop.xlane.xlu1 %127 }
  0xc9   :  { %569 = vrsqrt.f32 %v190_v10 }
  0xca   :  { %v191_v11 = vadd.f32 1e-05, %v183_v1  ;;  %v568_v33 = vpop.eup %567 }
  0xcb   :  { %v131_v14 = vpop.xlane.xlu0 %130 }
  0xcc   :  { %571 = vrsqrt.f32 %v191_v11  ;;  %v134_v19 = vpop.xlane.xlu1 %133 }
  0xcd   :  { %573 = vrsqrt.f32 %v188_v15 }
  0xce   :  { %575 = vrsqrt.f32 %v189_v16 }
  0xcf   :  { %v137_v24 = vpop.xlane.xlu0 %136 }
  0xd0   :  { %v140_v40 = vpop.xlane.xlu1 %139 }
  0xd3   :  { %v143_v41 = vpop.xlane.xlu0 %142  ;;  %v570_v42 = vpop.eup %569 }
  0xd6   :  { %v572_v47 = vpop.eup %571 }
  0xe1   :  { %s555_s0 = spop %554 }
  0xe2   :  { %v200_v32 = vstv %s555_s0 }
  0xe3   :  { %v201_v34 = vmul.f32 %v200_v32, %v795_v18  ;;  %v202_v36 = vmul.f32 %v200_v32, %v797_v20  ;;  %v203_v37 = vmul.f32 %v200_v32, %v799_v22  ;;  %v204_v38 = vmul.f32 %v200_v32, %v801_v23  ;;  %v574_v20 = vpop.eup %573 }
  0xe4   :  { %v205_v43 = vmul.f32 %v200_v32, %v813_v35  ;;  %v206_v44 = vmul.f32 %v200_v32, %v149_v39  ;;  %v207_v45 = vmul.f32 %v200_v32, %v805_v27  ;;  %v208_v46 = vmul.f32 %v200_v32, %v809_v31  ;;  %v576_v53 = vpop.eup %575 }
  0xe5   :  { %v209_v48 = vsub.f32 %v122_v60, %v201_v34  ;;  %v210_v49 = vsub.f32 %v125_v61, %v202_v36  ;;  %v211_v18 = vsub.f32 %v128_v12, %v203_v37  ;;  %v212_v50 = vsub.f32 %v131_v14, %v204_v38 }
  0xe6   :  { %v213_v51 = vsub.f32 %v134_v19, %v205_v43  ;;  %v214_v22 = vsub.f32 %v137_v24, %v206_v44  ;;  %v215_v52 = vsub.f32 %v140_v40, %v207_v45  ;;  %v216_v23 = vsub.f32 %v143_v41, %v208_v46 }
  0xe7   :  { %v217_v54 = vmul.f32 %v562_v26, %v209_v48  ;;  %v218_v55 = vmul.f32 %v564_v28, %v210_v49  ;;  %v219_v56 = vmul.f32 %v566_v29, %v211_v18  ;;  %v830_v35 = vmul.f32 %v568_v33, %v212_v50 }
  0xe8   :  { %v832_v39 = vmul.f32 %v574_v20, %v213_v51  ;;  %v834_v27 = vmul.f32 %v576_v53, %v214_v22  ;;  %v836_v31 = vmul.f32 %v570_v42, %v215_v52  ;;  %v838_v57 = vmul.f32 %v572_v47, %v216_v23 }
  0xe9   :  { %v225_v58 = vrot.slane %v217_v54, 4  ;;  %v231_v59 = vrot.slane %v218_v55, 4  ;;  %v237_v60 = vrot.slane %v219_v56, 4  ;;  %v243_v61 = vrot.slane %v830_v35, 4 }
  0xea   :  { %v249_v62 = vrot.slane %v832_v39, 4  ;;  %v255_v63 = vrot.slane %v834_v27, 4  ;;  %v261_v0 = vrot.slane %v836_v31, 4  ;;  %v267_v1 = vrot.slane %v838_v57, 4 }
  0xeb   :  { %v226_v2 = vmax.f32 %v217_v54, %v225_v58  ;;  %v232_v4 = vmax.f32 %v218_v55, %v231_v59  ;;  %v238_v7 = vmax.f32 %v219_v56, %v237_v60  ;;  %v244_v8 = vmax.f32 %v830_v35, %v243_v61 }
  0xec   :  { %v250_v10 = vmax.f32 %v832_v39, %v249_v62  ;;  %v256_v11 = vmax.f32 %v834_v27, %v255_v63  ;;  %v262_v12 = vmax.f32 %v836_v31, %v261_v0  ;;  %v268_v14 = vmax.f32 %v838_v57, %v267_v1 }
  0xed   :  { %v227_v15 = vrot.slane %v226_v2, 2  ;;  %v233_v16 = vrot.slane %v232_v4, 2  ;;  %v239_v19 = vrot.slane %v238_v7, 2  ;;  %v245_v24 = vrot.slane %v244_v8, 2 }
  0xee   :  { %v251_v26 = vrot.slane %v250_v10, 2  ;;  %v257_v28 = vrot.slane %v256_v11, 2  ;;  %v263_v29 = vrot.slane %v262_v12, 2  ;;  %v269_v32 = vrot.slane %v268_v14, 2 }
  0xef   :  { %v228_v33 = vmax.f32 %v226_v2, %v227_v15  ;;  %v234_v34 = vmax.f32 %v232_v4, %v233_v16  ;;  %v240_v36 = vmax.f32 %v238_v7, %v239_v19  ;;  %v246_v37 = vmax.f32 %v244_v8, %v245_v24 }
  0xf0   :  { %v252_v38 = vmax.f32 %v250_v10, %v251_v26  ;;  %v258_v40 = vmax.f32 %v256_v11, %v257_v28  ;;  %v264_v41 = vmax.f32 %v262_v12, %v263_v29  ;;  %v270_v42 = vmax.f32 %v268_v14, %v269_v32 }
  0xf1   :  { %v229_v43 = vrot.slane %v228_v33, 1  ;;  %v235_v44 = vrot.slane %v234_v34, 1  ;;  %v241_v45 = vrot.slane %v240_v36, 1  ;;  %v247_v46 = vrot.slane %v246_v37, 1 }
  0xf2   :  { %v253_v47 = vrot.slane %v252_v38, 1  ;;  %v259_v48 = vrot.slane %v258_v40, 1  ;;  %v265_v49 = vrot.slane %v264_v41, 1  ;;  %v271_v18 = vrot.slane %v270_v42, 1 }
  0xf3   :  { %v230_v50 = vmax.f32 %v228_v33, %v229_v43  ;;  %v236_v20 = vmax.f32 %v234_v34, %v235_v44  ;;  %v242_v51 = vmax.f32 %v240_v36, %v241_v45  ;;  %v248_v22 = vmax.f32 %v246_v37, %v247_v46 }
  0xf4   :  { %v254_v52 = vmax.f32 %v252_v38, %v253_v47  ;;  %v260_v23 = vmax.f32 %v258_v40, %v259_v48  ;;  %v266_v53 = vmax.f32 %v264_v41, %v265_v49  ;;  %v272_v58 = vmax.f32 %v270_v42, %v271_v18 }
  0xf5   :  { %v273_v59 = vsub.f32 %v217_v54, %v230_v50  ;;  %v274_v60 = vsub.f32 %v218_v55, %v236_v20  ;;  %v275_v61 = vsub.f32 %v219_v56, %v242_v51  ;;  %v276_v62 = vsub.f32 %v830_v35, %v248_v22 }
  0xf6   :  { %v277_v63 = vsub.f32 %v832_v39, %v254_v52  ;;  %v278_v0 = vsub.f32 %v834_v27, %v260_v23  ;;  %v279_v7 = vsub.f32 %v836_v31, %v266_v53  ;;  %v280_v10 = vsub.f32 %v838_v57, %v272_v58 }
  0xf7   :  { %v281_v1 = vmul.f32 1.442695, %v273_v59  ;;  %v283_v2 = vmul.f32 1.442695, %v274_v60  ;;  %v285_v4 = vmul.f32 1.442695, %v275_v61 }
  0xf8   :  { %v287_v8 = vmul.f32 1.442695, %v276_v62  ;;  %v289_v11 = vmul.f32 1.442695, %v277_v63  ;;  %v291_v54 = vmul.f32 1.442695, %v278_v0 }
  0xf9   :  { %577 = vpow2.f32 %v281_v1  ;;  %v293_v55 = vmul.f32 1.442695, %v279_v7  ;;  %v295_v56 = vmul.f32 1.442695, %v280_v10 }
  0xfa   :  { %579 = vpow2.f32 %v283_v2 }
  0xfb   :  { %581 = vpow2.f32 %v285_v4 }
  0xfc   :  { %583 = vpow2.f32 %v287_v8 }
  0xfd   :  { %585 = vpow2.f32 %v289_v11 }
  0xfe   :  { %587 = vpow2.f32 %v291_v54 }
  0xff   :  { %589 = vpow2.f32 %v293_v55 }
 0x100   :  { %591 = vpow2.f32 %v295_v56 }
 0x103   :  { %v855_v35 = vpop.eup %577 }
 0x104   :  { %v857_v39 = vpop.eup %579  ;;  %v297_v27 = vrot.slane %v855_v35, 4 }
 0x105   :  { %v860_v31 = vpop.eup %581  ;;  %v303_v57 = vrot.slane %v857_v39, 4 }
 0x106   :  { %v863_v12 = vpop.eup %583  ;;  %v298_v14 = vadd.f32 %v855_v35, %v297_v27  ;;  %v309_v15 = vrot.slane %v860_v31, 4 }
 0x107   :  { %v867_v16 = vpop.eup %585  ;;  %v304_v19 = vadd.f32 %v857_v39, %v303_v57  ;;  %v315_v24 = vrot.slane %v863_v12, 4 }
 0x108   :  { %v871_v26 = vpop.eup %587  ;;  %v299_v28 = vrot.slane %v298_v14, 2  ;;  %v310_v29 = vadd.f32 %v860_v31, %v309_v15  ;;  %v321_v32 = vrot.slane %v867_v16, 4 }
 0x109   :  { %v875_v33 = vpop.eup %589  ;;  %v305_v34 = vrot.slane %v304_v19, 2  ;;  %v316_v36 = vadd.f32 %v863_v12, %v315_v24  ;;  %v327_v37 = vrot.slane %v871_v26, 4 }
 0x10a   :  { %v879_v38 = vpop.eup %591  ;;  %v300_v40 = vadd.f32 %v299_v28, %v298_v14  ;;  %v311_v41 = vrot.slane %v310_v29, 2  ;;  %v322_v42 = vadd.f32 %v867_v16, %v321_v32  ;;  %v333_v43 = vrot.slane %v875_v33, 4 }
 0x10b   :  { %v306_v44 = vadd.f32 %v305_v34, %v304_v19  ;;  %v317_v45 = vrot.slane %v316_v36, 2  ;;  %v328_v46 = vadd.f32 %v871_v26, %v327_v37  ;;  %v339_v47 = vrot.slane %v879_v38, 4 }
 0x10c   :  { %v301_v48 = vrot.slane %v300_v40, 1  ;;  %v312_v49 = vadd.f32 %v311_v41, %v310_v29  ;;  %v323_v18 = vrot.slane %v322_v42, 2  ;;  %v334_v50 = vadd.f32 %v875_v33, %v333_v43 }
 0x10d   :  { %v307_v20 = vrot.slane %v306_v44, 1  ;;  %v318_v51 = vadd.f32 %v317_v45, %v316_v36  ;;  %v329_v22 = vrot.slane %v328_v46, 2  ;;  %v340_v52 = vadd.f32 %v879_v38, %v339_v47 }
 0x10e   :  { %v302_v23 = vadd.f32 %v301_v48, %v300_v40  ;;  %v313_v53 = vrot.slane %v312_v49, 1  ;;  %v324_v58 = vadd.f32 %v323_v18, %v322_v42  ;;  %v335_v59 = vrot.slane %v334_v50, 2 }
 0x10f   :  { %v308_v60 = vadd.f32 %v307_v20, %v306_v44  ;;  %v319_v61 = vrot.slane %v318_v51, 1  ;;  %v330_v62 = vadd.f32 %v329_v22, %v328_v46  ;;  %v341_v63 = vrot.slane %v340_v52, 2 }
 0x110   :  { %v314_v0 = vadd.f32 %v313_v53, %v312_v49  ;;  %v325_v1 = vrot.slane %v324_v58, 1  ;;  %v336_v2 = vadd.f32 %v335_v59, %v334_v50  ;;  %593 = vrcp.f32 %v302_v23 }
 0x111   :  { %v320_v4 = vadd.f32 %v319_v61, %v318_v51  ;;  %v331_v7 = vrot.slane %v330_v62, 1  ;;  %v342_v8 = vadd.f32 %v341_v63, %v340_v52  ;;  %595 = vrcp.f32 %v308_v60 }
 0x112   :  { %v326_v10 = vadd.f32 %v325_v1, %v324_v58  ;;  %v337_v11 = vrot.slane %v336_v2, 1  ;;  %597 = vrcp.f32 %v314_v0 }
 0x113   :  { %v332_v54 = vadd.f32 %v331_v7, %v330_v62  ;;  %v343_v55 = vrot.slane %v342_v8, 1  ;;  %599 = vrcp.f32 %v320_v4 }
 0x114   :  { %v338_v56 = vadd.f32 %v337_v11, %v336_v2  ;;  %601 = vrcp.f32 %v326_v10 }
 0x115   :  { %v344_v27 = vadd.f32 %v343_v55, %v342_v8  ;;  %603 = vrcp.f32 %v332_v54 }
 0x116   :  { %605 = vrcp.f32 %v338_v56 }
 0x117   :  { %607 = vrcp.f32 %v344_v27 }
 0x11a   :  { %v594_v57 = vpop.eup %593 }
 0x11b   :  { %v596_v14 = vpop.eup %595  ;;  %v353_v15 = vmul.f32 %v594_v57, %v302_v23 }
 0x11c   :  { %v598_v19 = vpop.eup %597  ;;  %v354_v24 = vmul.f32 %v596_v14, %v308_v60 }
 0x11d   :  { %v600_v28 = vpop.eup %599  ;;  %v355_v29 = vmul.f32 %v598_v19, %v314_v0  ;;  %v361_v32 = vsub.f32 2.0, %v353_v15 }
 0x11e   :  { %v602_v34 = vpop.eup %601  ;;  %v356_v36 = vmul.f32 %v600_v28, %v320_v4  ;;  %v362_v37 = vsub.f32 2.0, %v354_v24 }
 0x11f   :  { %v604_v40 = vpop.eup %603  ;;  %v357_v41 = vmul.f32 %v602_v34, %v326_v10  ;;  %v363_v42 = vsub.f32 2.0, %v355_v29  ;;  %v369_v43 = vmul.f32 %v594_v57, %v361_v32 }
 0x120   :  { %v606_v44 = vpop.eup %605  ;;  %v358_v45 = vmul.f32 %v604_v40, %v332_v54  ;;  %v364_v46 = vsub.f32 2.0, %v356_v36  ;;  %v370_v47 = vmul.f32 %v596_v14, %v362_v37 }
 0x121   :  { %v608_v48 = vpop.eup %607  ;;  %v359_v49 = vmul.f32 %v606_v44, %v338_v56  ;;  %v365_v18 = vsub.f32 2.0, %v357_v41  ;;  %v371_v50 = vmul.f32 %v598_v19, %v363_v42  ;;  %v888_v20 = vmul.f32 %v855_v35, %v369_v43 }
 0x122   :  { %v360_v51 = vmul.f32 %v608_v48, %v344_v27  ;;  %v366_v22 = vsub.f32 2.0, %v358_v45  ;;  %v372_v52 = vmul.f32 %v600_v28, %v364_v46  ;;  %v891_v23 = vmul.f32 %v857_v39, %v370_v47 }
 0x123   :  { %v367_v53 = vsub.f32 2.0, %v359_v49  ;;  %v373_v58 = vmul.f32 %v602_v34, %v365_v18  ;;  %v894_v59 = vmul.f32 %v860_v31, %v371_v50  ;;  %v385_v60 = vmul.f32 %v888_v20, %v723_v5 }
 0x124   :  { %v368_v61 = vsub.f32 2.0, %v360_v51  ;;  %v374_v62 = vmul.f32 %v604_v40, %v366_v22  ;;  %v899_v63 = vmul.f32 %v863_v12, %v372_v52  ;;  %v386_v35 = vmul.f32 %v891_v23, %v725_v6 }
 0x125   :  { %v375_v0 = vmul.f32 %v606_v44, %v367_v53  ;;  %v904_v39 = vmul.f32 %v867_v16, %v373_v58  ;;  %v387_v1 = vmul.f32 %v894_v59, %v729_v9  ;;  %v393_v31 = vsel %vm49_vm1, %v385_v60, 0.0 }
 0x126   :  { %v376_v2 = vmul.f32 %v608_v48, %v368_v61  ;;  %v910_v5 = vmul.f32 %v871_v26, %v374_v62  ;;  %v388_v12 = vmul.f32 %v899_v63, %v737_v13  ;;  %v394_v4 = vrot.slane %v393_v31, 4 }
 0x127   :  { %v915_v7 = vmul.f32 %v875_v33, %v375_v0  ;;  %v389_v6 = vmul.f32 %v904_v39, %v744_v17  ;;  %v400_v16 = vsel %vm49_vm1, %v386_v35, 0.0  ;;  %v407_v9 = vsel %vm49_vm1, %v387_v1, 0.0 }
 0x128   :  { %v922_v8 = vmul.f32 %v879_v38, %v376_v2  ;;  %v390_v26 = vmul.f32 %v910_v5, %v751_v21  ;;  %v395_v10 = vadd.f32 %v394_v4, %v393_v31  ;;  %v401_v11 = vrot.slane %v400_v16, 4 }
 0x129   :  { %v391_v13 = vmul.f32 %v915_v7, %v758_v25  ;;  %v408_v33 = vrot.slane %v407_v9, 4  ;;  %v414_v54 = vsel %vm49_vm1, %v388_v12, 0.0  ;;  %v421_v17 = vsel %vm49_vm1, %v389_v6, 0.0 }
 0x12a   :  { %v392_v55 = vmul.f32 %v922_v8, %v765_v30  ;;  %v396_v56 = vrot.slane %v395_v10, 2  ;;  %v402_v27 = vadd.f32 %v401_v11, %v400_v16  ;;  %v415_v38 = vrot.slane %v414_v54, 4 }
 0x12b   :  { %v409_v57 = vadd.f32 %v408_v33, %v407_v9  ;;  %v422_v14 = vrot.slane %v421_v17, 4  ;;  %v428_v21 = vsel %vm49_vm1, %v390_v26, 0.0  ;;  %v435_v15 = vsel %vm49_vm1, %v391_v13, 0.0 }
 0x12c   :  { %v397_v19 = vadd.f32 %v396_v56, %v395_v10  ;;  %v403_v25 = vrot.slane %v402_v27, 2  ;;  %v416_v24 = vadd.f32 %v415_v38, %v414_v54  ;;  %v429_v28 = vrot.slane %v428_v21, 4 }
 0x12d   :  { %v410_v29 = vrot.slane %v409_v57, 2  ;;  %v423_v32 = vadd.f32 %v422_v14, %v421_v17  ;;  %v436_v34 = vrot.slane %v435_v15, 4  ;;  %v442_v30 = vsel %vm49_vm1, %v392_v55, 0.0 }
 0x12e   :  { %v398_v36 = vrot.slane %v397_v19, 1  ;;  %v404_v37 = vadd.f32 %v403_v25, %v402_v27  ;;  %v417_v40 = vrot.slane %v416_v24, 2  ;;  %v430_v41 = vadd.f32 %v429_v28, %v428_v21 }
 0x12f   :  { %v411_v42 = vadd.f32 %v410_v29, %v409_v57  ;;  %v424_v43 = vrot.slane %v423_v32, 2  ;;  %v437_v44 = vadd.f32 %v436_v34, %v435_v15  ;;  %v443_v45 = vrot.slane %v442_v30, 4 }
 0x130   :  { %v399_v46 = vadd.f32 %v398_v36, %v397_v19  ;;  %v405_v47 = vrot.slane %v404_v37, 1  ;;  %v418_v48 = vadd.f32 %v417_v40, %v416_v24  ;;  %v431_v49 = vrot.slane %v430_v41, 2 }
 0x131   :  { %v412_v18 = vrot.slane %v411_v42, 1  ;;  %v425_v50 = vadd.f32 %v424_v43, %v423_v32  ;;  %v438_v51 = vrot.slane %v437_v44, 2  ;;  %v444_v22 = vadd.f32 %v443_v45, %v442_v30 }
 0x132   :  { %v406_v52 = vadd.f32 %v405_v47, %v404_v37  ;;  %v419_v53 = vrot.slane %v418_v48, 1  ;;  %v432_v58 = vadd.f32 %v431_v49, %v430_v41  ;;  %v486_v60 = vrot.slane %v888_v20, %v718_v3 }
 0x133   :  { %v413_v61 = vadd.f32 %v412_v18, %v411_v42  ;;  %v426_v62 = vrot.slane %v425_v50, 1  ;;  %v439_v35 = vadd.f32 %v438_v51, %v437_v44  ;;  %v445_v0 = vrot.slane %v444_v22, 2 }
 0x134   :  { %v420_v1 = vadd.f32 %v419_v53, %v418_v48  ;;  %v433_v31 = vrot.slane %v432_v58, 1  ;;  %v458_v2 = vsel %vm457_vm2, %v406_v52, %v399_v46  ;;  %v490_v12 = vrot.slane %v891_v23, %v718_v3 }
 0x135   :  { %v427_v4 = vadd.f32 %v426_v62, %v425_v50  ;;  %v440_v6 = vrot.slane %v439_v35, 1  ;;  %v446_v16 = vadd.f32 %v445_v0, %v444_v22  ;;  %v460_v9 = vsel %vm459_vm3, %v413_v61, %v458_v2 }
 0x136   :  { %v434_v26 = vadd.f32 %v433_v31, %v432_v58  ;;  %v462_v10 = vsel %vm461_vm4, %v420_v1, %v460_v9  ;;  %v494_v20 = vrot.slane %v894_v59, %v718_v3  ;;  %v498_v55 = vrot.slane %v899_v63, %v718_v3 }
 0x137   :  { %v441_v11 = vadd.f32 %v440_v6, %v439_v35  ;;  %v447_v13 = vrot.slane %v446_v16, 1  ;;  %v464_v33 = vsel %vm463_vm5, %v427_v4, %v462_v10  ;;  %v515_v56 = vsel %vm457_vm2, %v490_v12, %v486_v60 }
 0x138   :  { %v466_v23 = vsel %vm465_vm6, %v434_v26, %v464_v33  ;;  %v502_v59 = vrot.slane %v904_v39, %v718_v3  ;;  %v516_v27 = vsel %vm459_vm3, %v494_v20, %v515_v56  ;;  %v506_v57 = vrot.slane %v910_v5, %v718_v3 }
 0x139   :  { %v448_v54 = vadd.f32 %v447_v13, %v446_v16  ;;  %v468_v17 = vsel %vm467_vm7, %v441_v11, %v466_v23  ;;  %v517_v14 = vsel %vm461_vm4, %v498_v55, %v516_v27  ;;  %v510_v63 = vrot.slane %v915_v7, %v718_v3 }
 0x13a   :  { %v518_v21 = vsel %vm463_vm5, %v502_v59, %v517_v14 }
 0x13b   :  { %v470_v38 = vsel %vm469_vm8, %v448_v54, %v468_v17 }
 0x13c   :  { %472 = vst.msk [vmem:[#allocation5] sm:$0xff] %vm49_vm1, %v470_v38 }
 0x13d   :  { %642 = shalt.err (!%p639_p12)
}
 0x13e   :  { %s643_s7 = scalar_lea.hbm %s992_s2, 128 }
 0x13f   :  { %p644_p13 = scmp.ne.s32.totalorder %s992_s2, %s643_s7  ;;  %p647_p0 = scmp.lt.u32.totalorder %s643_s7, %s992_s2 }
 0x141   :  { %p649_p1 = pnand %p647_p0, %p644_p13 }
 0x143   :  { %652 = shalt.err (!%p649_p1)
}
 0x144   :  { %534 = dma.vmem_to_hbm [thread:$0]  %s532_s28, 128, %s992_s2, [#allocation4]   ;;  %v514_v39 = vrot.slane %v922_v8, %v718_v3  ;;  %v519_v5 = vsel %vm465_vm6, %v506_v57, %v518_v21  ;;  %vm523_vm9 = vcmask 64512  }
 0x145   :  { %v520_v7 = vsel %vm467_vm7, %v510_v63, %v519_v5  ;;  %s653_s14 = scalar_lea.vmem %s542_s30, 128  ;;  %p658_p3 = scmp.lt.s32.totalorder %s542_s30, %s542_s30 }
 0x146   :  { %v521_v15 = vsel %vm469_vm8, %v514_v39, %v520_v7  ;;  %p654_p2 = scmp.ne.s32.totalorder %s542_s30, %s653_s14  ;;  %p659_p4 = scmp.lt.s32.totalorder %s653_s14, %s653_s14 }
 0x147   :  { %524 = vst.msk [vmem:[#allocation6] sm:$0xff] %vm523_vm9, %v521_v15 }
 0x148   :  { %p660_p5 = por %p659_p4, %p658_p3 }
 0x14a   :  { %p661_p6 = pnand %p660_p5, %p654_p2 }
 0x14c   :  { %664 = shalt.err (!%p661_p6)
}
 0x14d   :  { %s665_s16 = scalar_lea.hbm %s993_s3, 128 }
 0x14e   :  { %p666_p7 = scmp.ne.s32.totalorder %s993_s3, %s665_s16  ;;  %p669_p8 = scmp.lt.u32.totalorder %s665_s16, %s993_s3 }
 0x150   :  { %p671_p9 = pnand %p669_p8, %p666_p7 }
 0x152   :  { %674 = shalt.err (!%p671_p9)
}
 0x153   :  { %544 = dma.vmem_to_hbm [thread:$0]  %s542_s30, 128, %s993_s3, [#allocation7]  }
 0x154   :  { %677 = dma.done.wait [#allocation4], 128  }
 0x155   :  { %678 = vsyncadd [#allocation4], 4294967168 }
 0x156   :  { %679 = dma.done.wait [#allocation7], 128  }
 0x157   :  { %680 = vsyncadd [#allocation7], 4294967168 }
 0x158   :  { %551 = vsyncpa [#allocation3], 1 }
 0x159   :  { %552 = vsyncpa [#allocation4], 1 }
 0x15a   :  { %553 = vsyncpa [#allocation7], 1 }

</bundles_post_ra>
